<compile_context>
chip_gen: v7x
topology: tpu7x:2x2x1
jax: 0.10.0
libtpu: 0.0.40
codegen_flags: <defaults>
</compile_context>

<pallas_src>
import functools
import math

import jax
import jax.numpy as jnp
import numpy as np
from jax.experimental import pallas as pl
from jax.experimental.pallas import tpu as pltpu

LANE = 128


def _round_up(x, m):
    return (x + m - 1) // m * m


# ----------------------- bilinear 2x (align_corners) as a matrix ----------------

def _interp_matrix_1d(n_in, n_out):
    """1-D align_corners=True linear-interpolation matrix (n_out, n_in)."""
    m = np.zeros((n_out, n_in), np.float32)
    if n_in == 1:
        m[:, 0] = 1.0
        return m
    for i in range(n_out):
        src = i * (n_in - 1) / (n_out - 1)
        i0 = min(int(math.floor(src)), n_in - 2)
        f = src - i0
        m[i, i0] += 1.0 - f
        m[i, i0 + 1] += f
    return m


def _bilinear_matrix(h_in, w_in, h_out, w_out):
    """(h_out*w_out, h_in*w_in): flattened 2x align_corners bilinear upsample."""
    r = _interp_matrix_1d(h_in, h_out)
    c = _interp_matrix_1d(w_in, w_out)
    return jnp.asarray(np.kron(r, c))  # row = h*w_out + w, col = H*w_in + W


# ----------------------------- fused unetUp kernel ------------------------------

def _unet_up_kernel(x1_ref, x2_ref, u_ref, w1_ref, b1_ref, w2_ref, b2_ref, o_ref,
                    *, H, W, H2, W2, C1, C2, COUT):
    """One full unetUp stage for one batch element, fully fused in VMEM:
       up2x(x2) -> concat(x1, .) -> pad -> conv3x3+ReLU -> pad -> conv3x3+ReLU.
       Both convs are im2col single matmuls (K = 9*Cin) feeding a 128-lane output."""
    f32 = jnp.float32
    CT = C1 + C2
    COUTP = o_ref.shape[-1]

    # --- 2x align_corners bilinear upsample as one MXU matmul (no gathers) ---
    x2 = x2_ref[0, :, :, :C2].astype(f32).reshape(H2 * W2, C2)
    up = jnp.dot(u_ref[...], x2, preferred_element_type=f32)          # (H*W, C2)
    up = up.reshape(H, W, C2).astype(jnp.bfloat16)

    def pad_hw(x):  # zero-pad H and W by 1 (value-level, stays in VMEM)
        h, w, c = x.shape
        zc = jnp.zeros((h, 1, c), x.dtype)
        x = jnp.concatenate([zc, x, zc], axis=1)
        zr = jnp.zeros((1, w + 2, c), x.dtype)
        return jnp.concatenate([zr, x, zr], axis=0)

    def conv3x3(xpad, w_ref_, b_ref_, cin):
        # im2col once -> a single matmul with contraction dim 9*cin.
        patch = jnp.concatenate(
            [xpad[dy:dy + H, dx:dx + W, :].reshape(H * W, cin)
             for dy in range(3) for dx in range(3)], axis=-1)          # (H*W, 9*cin)
        acc = jnp.dot(patch, w_ref_[...], preferred_element_type=f32)  # (H*W, COUTP)
        return jnp.maximum(acc + b_ref_[...], 0.0)

    # --- concat(skip, upsampled) + pad + conv1 + ReLU ---
    xcat = jnp.concatenate([x1_ref[0], up], axis=-1)                   # (H, W, CT) bf16
    a1 = conv3x3(pad_hw(xcat), w1_ref, b1_ref, CT)                     # (H*W, COUTP)

    # --- pad + conv2 + ReLU (only the true COUT channels feed conv2) ---
    h1 = a1[:, :COUT].reshape(H, W, COUT).astype(jnp.bfloat16)
    a2 = conv3x3(pad_hw(h1), w2_ref, b2_ref, COUT)                     # (H*W, COUTP)

    o_ref[...] = a2.reshape(1, H, W, COUTP).astype(o_ref.dtype)


def unet_up_stage(x1, x2, c2, w1k, b1k, w2k, b2k, cout):
    """cat([x1, up2x(x2)], C) -> conv3x3+ReLU -> conv3x3+ReLU as one pallas_call.

    x1: (N, H, W, C1) bf16 skip; x2: (N, H/2, W/2, >=c2) bf16 (lane-padded channels
    beyond c2 are zero and ignored). Output: (N, H, W, round_up(cout,128)) bf16 with
    padded channels exactly zero.
    """
    N, H, W, C1 = x1.shape
    _, H2, W2, C2ARR = x2.shape
    assert H == 2 * H2 and W == 2 * W2
    COUTP = w1k.shape[-1]
    u = _bilinear_matrix(H2, W2, H, W)

    kernel = functools.partial(_unet_up_kernel, H=H, W=W, H2=H2, W2=W2,
                               C1=C1, C2=c2, COUT=cout)
    return pl.pallas_call(
        kernel,
        out_shape=jax.ShapeDtypeStruct((N, H, W, COUTP), jnp.bfloat16),
        grid=(N,),
        in_specs=[
            pl.BlockSpec((1, H, W, C1), lambda n: (n, 0, 0, 0)),
            pl.BlockSpec((1, H2, W2, C2ARR), lambda n: (n, 0, 0, 0)),
            pl.BlockSpec((H * W, H2 * W2), lambda n: (0, 0)),
            pl.BlockSpec(tuple(w1k.shape), lambda n: (0, 0)),
            pl.BlockSpec(tuple(b1k.shape), lambda n: (0, 0)),
            pl.BlockSpec(tuple(w2k.shape), lambda n: (0, 0)),
            pl.BlockSpec(tuple(b2k.shape), lambda n: (0, 0)),
        ],
        out_specs=pl.BlockSpec((1, H, W, COUTP), lambda n: (n, 0, 0, 0)),
        compiler_params=pltpu.CompilerParams(
            dimension_semantics=("parallel",),
            vmem_limit_bytes=32 * 1024 * 1024),
    )(x1, x2, u, w1k, b1k, w2k, b2k)


# ----------------------------- final 1x1 conv -----------------------------------

def _conv1x1_kernel(x_ref, w_ref, b_ref, o_ref):
    acc = jnp.dot(x_ref[...], w_ref[...], preferred_element_type=jnp.float32)
    o_ref[...] = (acc + b_ref[...]).astype(o_ref.dtype)


def conv1x1(x, wk, bk, *, block_rows=256):
    """`final` 1x1 conv: row-tiled, lane-dense (Cout padded to 128) matmul."""
    N, H, W, CP = x.shape
    COUTP = wk.shape[-1]
    M = N * H * W
    xf = x.reshape(M, CP)
    tm = block_rows if M % block_rows == 0 else M
    out = pl.pallas_call(
        _conv1x1_kernel,
        out_shape=jax.ShapeDtypeStruct((M, COUTP), jnp.float32),
        grid=(M // tm,),
        in_specs=[
            pl.BlockSpec((tm, CP), lambda i: (i, 0)),
            pl.BlockSpec((CP, COUTP), lambda i: (0, 0)),
            pl.BlockSpec((1, COUTP), lambda i: (0, 0)),
        ],
        out_specs=pl.BlockSpec((tm, COUTP), lambda i: (i, 0)),
        compiler_params=pltpu.CompilerParams(
            dimension_semantics=("parallel",),
            vmem_limit_bytes=32 * 1024 * 1024),
    )(xf, wk, bk)
    return out.reshape(N, H, W, COUTP)


# ----------------------------- params --------------------------------------------

def kaiming_conv(key, kh, kw, cin, cout):
    fan_in = kh * kw * cin
    std = (2.0 / fan_in) ** 0.5
    return jax.random.normal(key, (kh, kw, cin, cout), jnp.float32) * std


def init_params(key, in_filters, out_filters, num_classes):
    params = {}
    keys = jax.random.split(key, 5)
    for i, name in enumerate(["up4", "up3", "up2", "up1"]):
        idx = 3 - i
        cin, cout = in_filters[idx], out_filters[idx]
        k1, k2 = jax.random.split(keys[i], 2)
        params[name] = {
            "w1": kaiming_conv(k1, 3, 3, cin, cout),
            "b1": jnp.zeros((cout,), jnp.float32),
            "w2": kaiming_conv(k2, 3, 3, cout, cout),
            "b2": jnp.zeros((cout,), jnp.float32),
        }
    params["final"] = {
        "w": kaiming_conv(keys[4], 1, 1, out_filters[0], num_classes),
        "b": jnp.zeros((num_classes,), jnp.float32),
    }
    return params


def _pack_conv(w_hwio, b, coutp):
    kh, kw, cin, cout = w_hwio.shape
    wk = w_hwio.reshape(kh * kw * cin, cout)          # im2col row order: (tap, cin)
    wk = jnp.pad(wk, ((0, 0), (0, coutp - cout))).astype(jnp.bfloat16)
    bk = jnp.pad(b, (0, coutp - cout)).astype(jnp.float32).reshape(1, coutp)
    return wk, bk


def pack_params(params, out_filters, num_classes):
    """HWIO f32 params -> im2col (9*Cin, Cout_pad128) bf16 kernel layout."""
    kp = {}
    for name, idx in (("up4", 3), ("up3", 2), ("up2", 1), ("up1", 0)):
        cout = out_filters[idx]
        coutp = _round_up(cout, LANE)
        p = params[name]
        w1k, b1k = _pack_conv(p["w1"], p["b1"], coutp)
        w2k, b2k = _pack_conv(p["w2"], p["b2"], coutp)
        kp[name] = {"w1": w1k, "b1": b1k, "w2": w2k, "b2": b2k}
    cinp = _round_up(out_filters[0], LANE)
    coutp = _round_up(num_classes, LANE)
    wf = params["final"]["w"].reshape(out_filters[0], num_classes)
    wf = jnp.pad(wf, ((0, cinp - out_filters[0]),
                      (0, coutp - num_classes))).astype(jnp.bfloat16)
    bf = jnp.pad(params["final"]["b"],
                 (0, coutp - num_classes)).astype(jnp.float32).reshape(1, coutp)
    kp["final"] = {"w": wf, "b": bf}
    return kp


# ----------------------------- decoder --------------------------------------------

def unet_decoder(feats, params, out_filters, num_classes):
    kp = pack_params(params, out_filters, num_classes)
    f1, f2, f3, f4, f5 = [f.astype(jnp.bfloat16) for f in feats]
    up4 = unet_up_stage(f4, f5, f5.shape[-1], kp["up4"]["w1"], kp["up4"]["b1"],
                        kp["up4"]["w2"], kp["up4"]["b2"], out_filters[3])
    up3 = unet_up_stage(f3, up4, out_filters[3], kp["up3"]["w1"], kp["up3"]["b1"],
                        kp["up3"]["w2"], kp["up3"]["b2"], out_filters[2])
    up2 = unet_up_stage(f2, up3, out_filters[2], kp["up2"]["w1"], kp["up2"]["b1"],
                        kp["up2"]["w2"], kp["up2"]["b2"], out_filters[1])
    up1 = unet_up_stage(f1, up2, out_filters[1], kp["up1"]["w1"], kp["up1"]["b1"],
                        kp["up1"]["w2"], kp["up1"]["b2"], out_filters[0])
    logits = conv1x1(up1, kp["final"]["w"], kp["final"]["b"])
    return logits[..., :num_classes]     # drop lane padding of the final conv


# ----------------------------- pure-JAX f32 reference -----------------------------

def _upsample_bilinear_2x_ref(x):
    N, H, W, C = x.shape
    Ho, Wo = 2 * H, 2 * W

    def coords(n_in, n_out):
        if n_in == 1:
            z = jnp.zeros((n_out,), jnp.int32)
            return z, z, jnp.zeros((n_out,), jnp.float32)
        src = jnp.arange(n_out, dtype=jnp.float32) * (n_in - 1) / (n_out - 1)
        i0 = jnp.clip(jnp.floor(src).astype(jnp.int32), 0, n_in - 2)
        return i0, i0 + 1, src - i0.astype(jnp.float32)

    r0, r1, rf = coords(H, Ho)
    c0, c1, cf = coords(W, Wo)
    xr0, xr1 = x[:, r0], x[:, r1]
    rf = rf[None, :, None, None]
    cf = cf[None, None, :, None]
    top = xr0[:, :, c0] * (1 - cf) + xr0[:, :, c1] * cf
    bot = xr1[:, :, c0] * (1 - cf) + xr1[:, :, c1] * cf
    return top * (1 - rf) + bot * rf


def _conv3x3_ref(x, w, b):
    y = jax.lax.conv_general_dilated(x, w, (1, 1), ((1, 1), (1, 1)),
                                     dimension_numbers=("NHWC", "HWIO", "NHWC"))
    return y + b


def unet_decoder_ref(feats, params, num_classes):
    f1, f2, f3, f4, f5 = feats

    def stage(x1, x2, p):
        x = jnp.concatenate([x1, _upsample_bilinear_2x_ref(x2)], axis=-1)
        x = jax.nn.relu(_conv3x3_ref(x, p["w1"], p["b1"]))
        return jax.nn.relu(_conv3x3_ref(x, p["w2"], p["b2"]))

    up4 = stage(f4, f5, params["up4"])
    up3 = stage(f3, up4, params["up3"])
    up2 = stage(f2, up3, params["up2"])
    up1 = stage(f1, up2, params["up1"])
    wf = params["final"]["w"].reshape(-1, num_classes)
    return jnp.einsum("nhwc,co->nhwo", up1, wf) + params["final"]["b"]


# ----------------------------- main ------------------------------------------------

if __name__ == "__main__":
    # Channel plan = reference module scaled by 1/16 to keep the example small:
    #   in_filters  [192, 384, 768, 1024] / 16 -> [12, 24, 48, 64]
    #   out_filters [ 64, 128, 256,  512] / 16 -> [ 4,  8, 16, 32]
    scale = 16
    in_filters = [192 // scale, 384 // scale, 768 // scale, 1024 // scale]
    out_filters = [64 // scale, 128 // scale, 256 // scale, 512 // scale]
    num_classes = 2
    N = 2

    feat_channels = [
        in_filters[0] - out_filters[1],   # feat1: 4
        in_filters[1] - out_filters[2],   # feat2: 8
        in_filters[2] - out_filters[3],   # feat3: 16
        in_filters[3] // 2,               # feat4: 32
        in_filters[3] // 2,               # feat5: 32
    ]
    base = 32
    spatial = [base, base // 2, base // 4, base // 8, base // 16]  # 32,16,8,4,2

    key = jax.random.PRNGKey(0)
    fkeys = jax.random.split(key, 5)
    feats = [
        jax.random.normal(fkeys[i], (N, spatial[i], spatial[i], feat_channels[i]),
                          jnp.float32)
        for i in range(5)
    ]
    params = init_params(jax.random.PRNGKey(1), in_filters, out_filters, num_classes)

    out_nhwc = unet_decoder(feats, params, out_filters, num_classes)
    out_nchw = jnp.transpose(out_nhwc, (0, 3, 1, 2)).astype(jnp.float32)
    jax.block_until_ready(out_nchw)
    assert out_nchw.shape == (N, num_classes, base, base)

    # Numerical check vs pure-JAX f32 reference (kernel uses bf16 MXU operands).
    ref_nchw = jnp.transpose(unet_decoder_ref(feats, params, num_classes), (0, 3, 1, 2))
    err = float(jnp.max(jnp.abs(out_nchw - ref_nchw)))
    ref_scale = float(jnp.max(jnp.abs(ref_nchw)))
    assert err <= 0.1 + 0.1 * ref_scale, f"mismatch vs reference: {err} (scale {ref_scale})"

    print("KERNEL_OK")
</pallas_src>

<mosaic_0001>
module attributes {stable_mosaic.version = 11 : i64} {
  func.func @_unet_up_kernel(%arg0: i32, %arg1: memref<1x4x4x32xbf16, #tpu.memory_space<vmem>>, %arg2: memref<1x2x2x32xbf16, #tpu.memory_space<vmem>>, %arg3: memref<16x4xf32, #tpu.memory_space<vmem>>, %arg4: memref<576x128xbf16, #tpu.memory_space<vmem>>, %arg5: memref<1x128xf32, #tpu.memory_space<vmem>>, %arg6: memref<288x128xbf16, #tpu.memory_space<vmem>>, %arg7: memref<1x128xf32, #tpu.memory_space<vmem>>, %arg8: memref<1x4x4x128xbf16, #tpu.memory_space<vmem>>) attributes {dimension_semantics = [#tpu.dimension_semantics<parallel>], iteration_bounds = array<i64: 2>, scalar_prefetch = 0 : i64, scratch_operands = 0 : i64, tpu.core_type = #tpu.core_type<tc>, window_params = [{transform_indices = @transform_0, window_bounds = array<i64: 1, 4, 4, 32>}, {transform_indices = @transform_1, window_bounds = array<i64: 1, 2, 2, 32>}, {pipeline_mode = #tpu.pipeline_mode<synchronous>, transform_indices = @transform_2, window_bounds = array<i64: 16, 4>}, {pipeline_mode = #tpu.pipeline_mode<synchronous>, transform_indices = @transform_3, window_bounds = array<i64: 576, 128>}, {pipeline_mode = #tpu.pipeline_mode<synchronous>, transform_indices = @transform_4, window_bounds = array<i64: 1, 128>}, {pipeline_mode = #tpu.pipeline_mode<synchronous>, transform_indices = @transform_5, window_bounds = array<i64: 288, 128>}, {pipeline_mode = #tpu.pipeline_mode<synchronous>, transform_indices = @transform_6, window_bounds = array<i64: 1, 128>}, {transform_indices = @transform_7, window_bounds = array<i64: 1, 4, 4, 128>}]} {
    %c0 = arith.constant 0 : index
    %c0_0 = arith.constant 0 : index
    %c0_1 = arith.constant 0 : index
    %c0_2 = arith.constant 0 : index
    %0 = vector.load %arg2[%c0, %c0_0, %c0_1, %c0_2] : memref<1x2x2x32xbf16, #tpu.memory_space<vmem>>, vector<1x2x2x32xbf16>
    %1 = vector.shape_cast %0 : vector<1x2x2x32xbf16> to vector<2x2x32xbf16>
    %2 = arith.extf %1 : vector<2x2x32xbf16> to vector<2x2x32xf32>
    %3 = vector.shape_cast %2 : vector<2x2x32xf32> to vector<4x32xf32>
    %c0_3 = arith.constant 0 : index
    %c0_4 = arith.constant 0 : index
    %4 = vector.load %arg3[%c0_3, %c0_4] : memref<16x4xf32, #tpu.memory_space<vmem>>, vector<16x4xf32>
    %cst = arith.constant dense<0.000000e+00> : vector<16x32xf32>
    %5 = tpu.matmul %4, %3, %cst {dimension_numbers = #tpu.dot_dimension_numbers<[1], [0], [0], [1], [0, 0, 1, 1], [], []>} : vector<16x4xf32>, vector<4x32xf32>, vector<16x32xf32> -> vector<16x32xf32>
    %6 = vector.shape_cast %5 : vector<16x32xf32> to vector<4x4x32xf32>
    %7 = arith.truncf %6 : vector<4x4x32xf32> to vector<4x4x32xbf16>
    %c0_5 = arith.constant 0 : index
    %c0_6 = arith.constant 0 : index
    %c0_7 = arith.constant 0 : index
    %c0_8 = arith.constant 0 : index
    %8 = vector.load %arg1[%c0_5, %c0_6, %c0_7, %c0_8] : memref<1x4x4x32xbf16, #tpu.memory_space<vmem>>, vector<1x4x4x32xbf16>
    %9 = vector.shape_cast %8 : vector<1x4x4x32xbf16> to vector<4x4x32xbf16>
    %10 = tpu.concatenate %9, %7 in 2 : vector<4x4x32xbf16>, vector<4x4x32xbf16> -> vector<4x4x64xbf16>
    %cst_9 = arith.constant 0.000000e+00 : bf16
    %11 = vector.broadcast %cst_9 : bf16 to vector<4x1x64xbf16>
    %12 = tpu.concatenate %11, %10, %11 in 1 : vector<4x1x64xbf16>, vector<4x4x64xbf16>, vector<4x1x64xbf16> -> vector<4x6x64xbf16>
    %cst_10 = arith.constant 0.000000e+00 : bf16
    %13 = vector.broadcast %cst_10 : bf16 to vector<1x6x64xbf16>
    %14 = tpu.concatenate %13, %12, %13 in 0 : vector<1x6x64xbf16>, vector<4x6x64xbf16>, vector<1x6x64xbf16> -> vector<6x6x64xbf16>
    %15 = vector.extract_strided_slice %14 {offsets = [0, 0, 0], sizes = [4, 4, 64], strides = [1, 1, 1]} : vector<6x6x64xbf16> to vector<4x4x64xbf16>
    %16 = vector.shape_cast %15 : vector<4x4x64xbf16> to vector<16x64xbf16>
    %17 = vector.extract_strided_slice %14 {offsets = [0, 1, 0], sizes = [4, 4, 64], strides = [1, 1, 1]} : vector<6x6x64xbf16> to vector<4x4x64xbf16>
    %18 = vector.shape_cast %17 : vector<4x4x64xbf16> to vector<16x64xbf16>
    %19 = vector.extract_strided_slice %14 {offsets = [0, 2, 0], sizes = [4, 4, 64], strides = [1, 1, 1]} : vector<6x6x64xbf16> to vector<4x4x64xbf16>
    %20 = vector.shape_cast %19 : vector<4x4x64xbf16> to vector<16x64xbf16>
    %21 = vector.extract_strided_slice %14 {offsets = [1, 0, 0], sizes = [4, 4, 64], strides = [1, 1, 1]} : vector<6x6x64xbf16> to vector<4x4x64xbf16>
    %22 = vector.shape_cast %21 : vector<4x4x64xbf16> to vector<16x64xbf16>
    %23 = vector.extract_strided_slice %14 {offsets = [1, 1, 0], sizes = [4, 4, 64], strides = [1, 1, 1]} : vector<6x6x64xbf16> to vector<4x4x64xbf16>
    %24 = vector.shape_cast %23 : vector<4x4x64xbf16> to vector<16x64xbf16>
    %25 = vector.extract_strided_slice %14 {offsets = [1, 2, 0], sizes = [4, 4, 64], strides = [1, 1, 1]} : vector<6x6x64xbf16> to vector<4x4x64xbf16>
    %26 = vector.shape_cast %25 : vector<4x4x64xbf16> to vector<16x64xbf16>
    %27 = vector.extract_strided_slice %14 {offsets = [2, 0, 0], sizes = [4, 4, 64], strides = [1, 1, 1]} : vector<6x6x64xbf16> to vector<4x4x64xbf16>
    %28 = vector.shape_cast %27 : vector<4x4x64xbf16> to vector<16x64xbf16>
    %29 = vector.extract_strided_slice %14 {offsets = [2, 1, 0], sizes = [4, 4, 64], strides = [1, 1, 1]} : vector<6x6x64xbf16> to vector<4x4x64xbf16>
    %30 = vector.shape_cast %29 : vector<4x4x64xbf16> to vector<16x64xbf16>
    %31 = vector.extract_strided_slice %14 {offsets = [2, 2, 0], sizes = [4, 4, 64], strides = [1, 1, 1]} : vector<6x6x64xbf16> to vector<4x4x64xbf16>
    %32 = vector.shape_cast %31 : vector<4x4x64xbf16> to vector<16x64xbf16>
    %33 = tpu.concatenate %16, %18, %20, %22, %24, %26, %28, %30, %32 in 1 : vector<16x64xbf16>, vector<16x64xbf16>, vector<16x64xbf16>, vector<16x64xbf16>, vector<16x64xbf16>, vector<16x64xbf16>, vector<16x64xbf16>, vector<16x64xbf16>, vector<16x64xbf16> -> vector<16x576xbf16>
    %c0_11 = arith.constant 0 : index
    %c0_12 = arith.constant 0 : index
    %34 = vector.load %arg4[%c0_11, %c0_12] : memref<576x128xbf16, #tpu.memory_space<vmem>>, vector<576x128xbf16>
    %cst_13 = arith.constant dense<0.000000e+00> : vector<16x128xf32>
    %35 = tpu.matmul %33, %34, %cst_13 {dimension_numbers = #tpu.dot_dimension_numbers<[1], [0], [0], [1], [0, 0, 1, 1], [], []>} : vector<16x576xbf16>, vector<576x128xbf16>, vector<16x128xf32> -> vector<16x128xf32>
    %c0_14 = arith.constant 0 : index
    %c0_15 = arith.constant 0 : index
    %36 = vector.load %arg5[%c0_14, %c0_15] : memref<1x128xf32, #tpu.memory_space<vmem>>, vector<1x128xf32>
    %37 = vector.broadcast %36 : vector<1x128xf32> to vector<16x128xf32>
    %38 = arith.addf %35, %37 : vector<16x128xf32>
    %cst_16 = arith.constant 0.000000e+00 : f32
    %39 = vector.broadcast %cst_16 : f32 to vector<16x128xf32>
    %40 = arith.maximumf %38, %39 : vector<16x128xf32>
    %41 = vector.extract_strided_slice %40 {offsets = [0, 0], sizes = [16, 32], strides = [1, 1]} : vector<16x128xf32> to vector<16x32xf32>
    %42 = vector.shape_cast %41 : vector<16x32xf32> to vector<4x4x32xf32>
    %43 = arith.truncf %42 : vector<4x4x32xf32> to vector<4x4x32xbf16>
    %cst_17 = arith.constant 0.000000e+00 : bf16
    %44 = vector.broadcast %cst_17 : bf16 to vector<4x1x32xbf16>
    %45 = tpu.concatenate %44, %43, %44 in 1 : vector<4x1x32xbf16>, vector<4x4x32xbf16>, vector<4x1x32xbf16> -> vector<4x6x32xbf16>
    %cst_18 = arith.constant 0.000000e+00 : bf16
    %46 = vector.broadcast %cst_18 : bf16 to vector<1x6x32xbf16>
    %47 = tpu.concatenate %46, %45, %46 in 0 : vector<1x6x32xbf16>, vector<4x6x32xbf16>, vector<1x6x32xbf16> -> vector<6x6x32xbf16>
    %48 = vector.extract_strided_slice %47 {offsets = [0, 0, 0], sizes = [4, 4, 32], strides = [1, 1, 1]} : vector<6x6x32xbf16> to vector<4x4x32xbf16>
    %49 = vector.shape_cast %48 : vector<4x4x32xbf16> to vector<16x32xbf16>
    %50 = vector.extract_strided_slice %47 {offsets = [0, 1, 0], sizes = [4, 4, 32], strides = [1, 1, 1]} : vector<6x6x32xbf16> to vector<4x4x32xbf16>
    %51 = vector.shape_cast %50 : vector<4x4x32xbf16> to vector<16x32xbf16>
    %52 = vector.extract_strided_slice %47 {offsets = [0, 2, 0], sizes = [4, 4, 32], strides = [1, 1, 1]} : vector<6x6x32xbf16> to vector<4x4x32xbf16>
    %53 = vector.shape_cast %52 : vector<4x4x32xbf16> to vector<16x32xbf16>
    %54 = vector.extract_strided_slice %47 {offsets = [1, 0, 0], sizes = [4, 4, 32], strides = [1, 1, 1]} : vector<6x6x32xbf16> to vector<4x4x32xbf16>
    %55 = vector.shape_cast %54 : vector<4x4x32xbf16> to vector<16x32xbf16>
    %56 = vector.extract_strided_slice %47 {offsets = [1, 1, 0], sizes = [4, 4, 32], strides = [1, 1, 1]} : vector<6x6x32xbf16> to vector<4x4x32xbf16>
    %57 = vector.shape_cast %56 : vector<4x4x32xbf16> to vector<16x32xbf16>
    %58 = vector.extract_strided_slice %47 {offsets = [1, 2, 0], sizes = [4, 4, 32], strides = [1, 1, 1]} : vector<6x6x32xbf16> to vector<4x4x32xbf16>
    %59 = vector.shape_cast %58 : vector<4x4x32xbf16> to vector<16x32xbf16>
    %60 = vector.extract_strided_slice %47 {offsets = [2, 0, 0], sizes = [4, 4, 32], strides = [1, 1, 1]} : vector<6x6x32xbf16> to vector<4x4x32xbf16>
    %61 = vector.shape_cast %60 : vector<4x4x32xbf16> to vector<16x32xbf16>
    %62 = vector.extract_strided_slice %47 {offsets = [2, 1, 0], sizes = [4, 4, 32], strides = [1, 1, 1]} : vector<6x6x32xbf16> to vector<4x4x32xbf16>
    %63 = vector.shape_cast %62 : vector<4x4x32xbf16> to vector<16x32xbf16>
    %64 = vector.extract_strided_slice %47 {offsets = [2, 2, 0], sizes = [4, 4, 32], strides = [1, 1, 1]} : vector<6x6x32xbf16> to vector<4x4x32xbf16>
    %65 = vector.shape_cast %64 : vector<4x4x32xbf16> to vector<16x32xbf16>
    %66 = tpu.concatenate %49, %51, %53, %55, %57, %59, %61, %63, %65 in 1 : vector<16x32xbf16>, vector<16x32xbf16>, vector<16x32xbf16>, vector<16x32xbf16>, vector<16x32xbf16>, vector<16x32xbf16>, vector<16x32xbf16>, vector<16x32xbf16>, vector<16x32xbf16> -> vector<16x288xbf16>
    %c0_19 = arith.constant 0 : index
    %c0_20 = arith.constant 0 : index
    %67 = vector.load %arg6[%c0_19, %c0_20] : memref<288x128xbf16, #tpu.memory_space<vmem>>, vector<288x128xbf16>
    %cst_21 = arith.constant dense<0.000000e+00> : vector<16x128xf32>
    %68 = tpu.matmul %66, %67, %cst_21 {dimension_numbers = #tpu.dot_dimension_numbers<[1], [0], [0], [1], [0, 0, 1, 1], [], []>} : vector<16x288xbf16>, vector<288x128xbf16>, vector<16x128xf32> -> vector<16x128xf32>
    %c0_22 = arith.constant 0 : index
    %c0_23 = arith.constant 0 : index
    %69 = vector.load %arg7[%c0_22, %c0_23] : memref<1x128xf32, #tpu.memory_space<vmem>>, vector<1x128xf32>
    %70 = vector.broadcast %69 : vector<1x128xf32> to vector<16x128xf32>
    %71 = arith.addf %68, %70 : vector<16x128xf32>
    %cst_24 = arith.constant 0.000000e+00 : f32
    %72 = vector.broadcast %cst_24 : f32 to vector<16x128xf32>
    %73 = arith.maximumf %71, %72 : vector<16x128xf32>
    %74 = vector.shape_cast %73 : vector<16x128xf32> to vector<1x4x4x128xf32>
    %75 = arith.truncf %74 : vector<1x4x4x128xf32> to vector<1x4x4x128xbf16>
    %c0_25 = arith.constant 0 : index
    %c0_26 = arith.constant 0 : index
    %c0_27 = arith.constant 0 : index
    %c0_28 = arith.constant 0 : index
    %76 = vector.load %arg8[%c0_25, %c0_26, %c0_27, %c0_28] : memref<1x4x4x128xbf16, #tpu.memory_space<vmem>>, vector<1x4x4x128xbf16>
    tpu.vector_store %arg8[%c0_25, %c0_26, %c0_27, %c0_28], %75 {strides = array<i32>} : memref<1x4x4x128xbf16, #tpu.memory_space<vmem>>, vector<1x4x4x128xbf16>,
    return
  }
  func.func @transform_0(%arg0: i32) -> (i32, i32, i32, i32) {
    %c0_i32 = arith.constant 0 : i32
    %c0_i32_0 = arith.constant 0 : i32
    %c0_i32_1 = arith.constant 0 : i32
    %c0_i32_2 = arith.constant 0 : i32
    return %arg0, %c0_i32, %c0_i32_0, %c0_i32_1 : i32, i32, i32, i32
  }
  func.func @transform_1(%arg0: i32) -> (i32, i32, i32, i32) {
    %c0_i32 = arith.constant 0 : i32
    %c0_i32_0 = arith.constant 0 : i32
    %c0_i32_1 = arith.constant 0 : i32
    %c0_i32_2 = arith.constant 0 : i32
    return %arg0, %c0_i32, %c0_i32_0, %c0_i32_1 : i32, i32, i32, i32
  }
  func.func @transform_2(%arg0: i32) -> (i32, i32) {
    %c0_i32 = arith.constant 0 : i32
    %c0_i32_0 = arith.constant 0 : i32
    %c0_i32_1 = arith.constant 0 : i32
    return %c0_i32, %c0_i32_0 : i32, i32
  }
  func.func @transform_3(%arg0: i32) -> (i32, i32) {
    %c0_i32 = arith.constant 0 : i32
    %c0_i32_0 = arith.constant 0 : i32
    %c0_i32_1 = arith.constant 0 : i32
    return %c0_i32, %c0_i32_0 : i32, i32
  }
  func.func @transform_4(%arg0: i32) -> (i32, i32) {
    %c0_i32 = arith.constant 0 : i32
    %c0_i32_0 = arith.constant 0 : i32
    %c0_i32_1 = arith.constant 0 : i32
    return %c0_i32, %c0_i32_0 : i32, i32
  }
  func.func @transform_5(%arg0: i32) -> (i32, i32) {
    %c0_i32 = arith.constant 0 : i32
    %c0_i32_0 = arith.constant 0 : i32
    %c0_i32_1 = arith.constant 0 : i32
    return %c0_i32, %c0_i32_0 : i32, i32
  }
  func.func @transform_6(%arg0: i32) -> (i32, i32) {
    %c0_i32 = arith.constant 0 : i32
    %c0_i32_0 = arith.constant 0 : i32
    %c0_i32_1 = arith.constant 0 : i32
    return %c0_i32, %c0_i32_0 : i32, i32
  }
  func.func @transform_7(%arg0: i32) -> (i32, i32, i32, i32) {
    %c0_i32 = arith.constant 0 : i32
    %c0_i32_0 = arith.constant 0 : i32
    %c0_i32_1 = arith.constant 0 : i32
    %c0_i32_2 = arith.constant 0 : i32
    return %arg0, %c0_i32, %c0_i32_0, %c0_i32_1 : i32, i32, i32, i32
  }
}

</mosaic_0001>

<bundles_post_ra>
// kernel: tpu_custom_call.1
= control target key start
LH: loop header
LB: loop body
LE: loop exit
PB: predicated region body
PF: predicated region fallthrough
CT: control target
= control target key end

     0   :  { %12 = vsyncpa [#allocation3], 0  ;;  %s2879_s0 = inlined_call_operand.vmem [shape: bf16[2,4,4,32], index: 0, kind: input, shape index: {}]   ;;  %s2880_s1 = inlined_call_operand.vmem [shape: bf16[2,2,2,32], index: 1, kind: input, shape index: {}]   ;;  %s2881_s2 = inlined_call_operand.vmem [shape: f32[16,4], index: 2, kind: input, shape index: {}]   ;;  %s2882_s3 = inlined_call_operand.hbm [shape: bf16[576,128], index: 3, kind: input, shape index: {}]   ;;  %s2883_s4 = inlined_call_operand.vmem [shape: f32[1,128], index: 4, kind: input, shape index: {}]   ;;  %s2884_s5 = inlined_call_operand.hbm [shape: bf16[288,128], index: 5, kind: input, shape index: {}]   ;;  %s2885_s6 = inlined_call_operand.vmem [shape: f32[1,128], index: 6, kind: input, shape index: {}]   ;;  %s2886_s7 = inlined_call_operand.hbm [shape: bf16[2,4,4,128], index: 7, kind: output, shape index: {}]  }
   0x1   :  { %13 = vsyncpa [#allocation6], 0 }
   0x2   :  { %14 = vsyncpa [#allocation4], 0 }
   0x3   :  { %16 = vsyncpa [#allocation4 + $0x1], 0  ;;  %s2406_s24 = smov 0   ;;  %s2408_s25 = smov 0  }
   0x4   :  { %s2410_s26 = smov 0   ;;  %s2412_s27 = smov 0  }
   0x5 LB: > { %s2427_s28 = sadd.s32 4294967295, %s2351_s27   ;;  %s1910_s29 = sadd.s32 4294967294, %s2351_s27   ;;  %s2351_s27 = sphi %s2412_s27, %s2918_s27   ;;  %s2347_s26 = sphi %s2410_s26, %s2917_s26   ;;  %s2343_s25 = sphi %s2408_s25, %s2916_s25   ;;  %s2339_s24 = sphi %s2406_s24, %s2915_s24  }
   0x6   : > { %s2431_s30 = sadd.s32 1, %s2351_s27   ;;  %s186_s8 = sadd.s32 1, %s2347_s26 }
   0x7   : > { %s183_s9 = ssub.s32 %s2351_s27, %s2431_s30  ;;  %p196_p0 = scmp.ne.s32.totalorder %s2347_s26, %s2343_s25 }
   0x8   : > { %p184_p1 = scmp.eq.s32.totalorder %s183_s9, 0  ;;  %p197_p2 = scmp.eq.s32.totalorder %s2427_s28, 1 }
   0x9   : > { %p202_p3 = scmp.ne.s32.totalorder %s2343_s25, %s2339_s24  ;;  %p203_p4 = scmp.eq.s32.totalorder %s1910_s29, 1 }
   0xa   : > { %s2442_s10 = scalar_select %p184_p1, %s2347_s26, %s186_s8  }
   0xb   : > { %p2444_p5 = por %p197_p2, %p196_p0  ;;  %p2448_p6 = por %p203_p4, %p202_p3 }
   0xc   : > { %2890 = sst [smem:[#allocation11_spill]] %s2442_s10  ;;  %p1911_p7 = scmp.ge.s32.totalorder %s2351_s27, 1 }
   0xd   : > { %s2891_s11 = scalar_select %p2444_p5, 1, 0 }
   0xe   : > { %s2892_s12 = scalar_select %p2448_p6, 1, 0 }
   0xf   : > { %p210_p8 = scmp.lt.s32.totalorder %s2351_s27, 3  ;;  %p2887_p9 = scmp.eq.s32.totalorder %s2427_s28, 0 }
  0x10   : > { %s2353_s14 = smov [#allocation2]   ;;  %s2354_s17 = smov [#allocation5]  }
  0x11   : > { %p2455_p10 = pnand %p1911_p7, %p210_p8  ;;  %s225_s15 = sshll.u32 %s2353_s14, 4  ;;  %s226_s15 = int_to_ptr.vmem [resolvable:$true] %s225_s15 }
  0x12   : > { %s241_s18 = sshll.u32 %s2354_s17, 4  ;;  %s2225_s21 = scalar_lea.hbm %s2882_s3, 4608  ;;  %s2467_s18 = int_to_ptr.vmem [resolvable:$true] %s241_s18 }
  0x13   : > { %s2893_s13 = scalar_select %p2455_p10, 1, 0 }
  0x14   : > { %p2111_p11 = pneg %p2455_p10  ;;  %p2226_p13 = scmp.ne.s32.totalorder %s2882_s3, %s2225_s21 }
  0x15   : > { %p2232_p3 = scmp.lt.u32.totalorder %s2225_s21, %s2882_s3 }
  0x16   : > { %p2463_p12 = pnand %p2887_p9, %p2111_p11 }
  0x18   : > { %p2227_p0 = pneg %p2463_p12 }
  0x1a   : > { %p2228_p1 = pnand %p2227_p0, %p2226_p13 }
  0x1c   : > { %p2229_p2 = pneg %p2228_p1 }
  0x1e   : > { %p2234_p4 = pnand %p2232_p3, %p2229_p2 }
  0x20   : > { %2237 = shalt.err (!%p2234_p4)
}
  0x21   : > { %s2238_s9 = scalar_lea.vmem %s226_s15, 4608  ;;  %p2246_p9 = scmp.lt.s32.totalorder %s226_s15, %s226_s15 }
  0x22   : > { %p2239_p7 = scmp.ne.s32.totalorder %s226_s15, %s2238_s9  ;;  %p2247_p6 = scmp.lt.s32.totalorder %s2238_s9, %s2238_s9 }
  0x24   : > { %p2241_p8 = pnand %p2239_p7, %p2227_p0  ;;  %p2248_p5 = por %p2247_p6, %p2246_p9 }
  0x26   : > { %p2242_p11 = pneg %p2241_p8 }
  0x28   : > { %p2249_p10 = pnand %p2248_p5, %p2242_p11 }
  0x2a   : > { %2252 = shalt.err (!%p2249_p10)
}
  0x2b   : > { %s2355_s14 = smov 64   ;;  %s2356_s17 = smov 4  }
  0x2c   : > { %2114 = dma.hbm_to_vmem [thread:$0]  (!%p2463_p12), %s2882_s3, 4608, %s226_s15, [#allocation3], %s2355_s14, %s2355_s14, %s2356_s17  }
  0x2d   : > { %s2253_s23 = scalar_lea.hbm %s2884_s5, 2304 }
  0x2e   : > { %p2254_p13 = scmp.ne.s32.totalorder %s2884_s5, %s2253_s23  ;;  %p2260_p9 = scmp.lt.u32.totalorder %s2253_s23, %s2884_s5 }
  0x30   : > { %p2256_p5 = pnand %p2254_p13, %p2227_p0 }
  0x32   : > { %p2257_p6 = pneg %p2256_p5 }
  0x34   : > { %p2262_p10 = pnand %p2260_p9, %p2257_p6 }
  0x36   : > { %2265 = shalt.err (!%p2262_p10)
}
  0x37   : > { %s2266_s15 = scalar_lea.vmem %s2467_s18, 2304  ;;  %p2274_p4 = scmp.lt.s32.totalorder %s2467_s18, %s2467_s18 }
  0x38   : > { %p2267_p1 = scmp.ne.s32.totalorder %s2467_s18, %s2266_s15  ;;  %p2275_p7 = scmp.lt.s32.totalorder %s2266_s15, %s2266_s15 }
  0x3a   : > { %p2269_p2 = pnand %p2267_p1, %p2227_p0  ;;  %p2276_p8 = por %p2275_p7, %p2274_p4 }
  0x3c   : > { %p2270_p3 = pneg %p2269_p2 }
  0x3e   : > { %p2277_p11 = pnand %p2276_p8, %p2270_p3 }
  0x40   : > { %2280 = shalt.err (!%p2277_p11)
}
  0x41   : > { %2117 = dma.hbm_to_vmem [thread:$0]  (!%p2463_p12), %s2884_s5, 2304, %s2467_s18, [#allocation6], %s2355_s14, %s2355_s14, %s2356_s17  }
  0x42   : > { %p2895_p13 = scmp.ne.s32.totalorder %s2893_s13, 0 }
  0x43   : > { %p2896_p5 = scmp.eq.s32.totalorder (!%p2895_p13), %s2427_s28, 0 }
  0x44   : > { %275 = sbr.rel (%p2895_p13) target bundleno = 1208 (0x4b8), region = 48 }
  0x4b   : > { %2326 = dma.done.wait (%p2896_p5), [#allocation3], 4608   ;;  %p2897_p0 = pmov %p2896_p5 }
  0x4d   : > { %2328 = vsyncadd (%p2897_p0), [#allocation3], 4294962688  ;;  %p2898_p6 = pmov %p2897_p0 }
  0x4e   : > { %p2899_p9 = pmov %p2897_p0 }
  0x4f   : > { %2330 = dma.done.wait (%p2898_p6), [#allocation6], 2304  }
  0x50   : > { %2332 = vsyncadd (%p2899_p9), [#allocation6], 4294964992  ;;  %p315_p10 = scmp.lt.s32.totalorder %s2427_s28, 1  ;;  %v337_v0 = vlaneseq  ;;  %v2357_v1 = vmov 1983009808   ;;  %vm341_vm0 = vcmask 31744  }
  0x51   : > { %v335_v2 = vunpack.c.l.s4 %v2357_v1  ;;  %v329_v7 = vld [vmem:[%s2881_s2] sm:$0xff]  ;;  %vm348_vm1 = vcmask 1043456   ;;  %v330_v12 = vld [vmem:[%s2881_s2 + $0x8] sm:$0xff]  ;;  %vm606_vm2 = vcmask 1042434   ;;  %s2358_s29 = smov 32   ;;  %vm493_vm3 = vcmask 1040384  }
  0x52   : > { %s2528_s13 = scalar_select %p315_p10, %s2427_s28, 1  ;;  %v338_v4 = vshrl.u32 %v337_v0, 7  ;;  %2078 = vmatprep.mubr.msk.f32.mxu1 %vm341_vm0, %v329_v7  ;;  %v2359_v20 = vmov 0   ;;  %vm607_vm4 = vmor %vm493_vm3, %vm606_vm2  ;;  %vm608_vm5 = vcmask 1044484   ;;  %vm610_vm7 = vcmask 1046534   ;;  %v2171_v29 = vld [vmem:[#allocation2 + $0x40] sm:$0xff]  }
  0x53   : > { %v336_v3 = vunpack.c.0.s8 %v335_v2  ;;  %vm609_vm6 = vmor %vm607_vm4, %vm608_vm5  ;;  %v2172_v30 = vld [vmem:[#allocation2] sm:$0xff]   ;;  %v2173_v31 = vld [vmem:[#allocation2 + $0x48] sm:$0xff]   ;;  %vm452_vm9 = vcmask 261120   ;;  %vm543_vm10 = vsmask.f32 1280  ;;  %vm500_vm15 = vcmask 1042432  }
  0x54   : > { %s1921_s16 = sshll.u32 %s2528_s13, 1  ;;  %vm2552_vm8 = vmor %vm609_vm6, %vm610_vm7  ;;  %v2175_v32 = vld [vmem:[#allocation2 + $0xc0] sm:$0xff]   ;;  %v2179_v34 = vld [vmem:[#allocation2 + $0xc8] sm:$0xff]   ;;  %s1997_s8 = sshll.u32 %s2528_s13, 3  ;;  %vm544_vm11 = vsmask.f32 3336 }
  0x55   : > { %s323_s17 = scalar_lea.vmem %s2880_s1, %s1921_s16  ;;  %v2537_v10 = vsub.s32 %v336_v3, %v338_v4  ;;  %v2176_v33 = vld [vmem:[#allocation2 + $0x80] sm:$0xff]   ;;  %v2174_v35 = vld [vmem:[#allocation2 + $0x8] sm:$0xff]   ;;  %2024 = vmatprep.subr.bf16.mxu0 %v2175_v32  ;;  %v2177_v36 = vld [vmem:[#allocation2 + $0x50] sm:$0xff]   ;;  %s319_s10 = scalar_lea.vmem %s2879_s0, %s1997_s8  ;;  %vm546_vm13 = vsmask.f32 5392  ;;  %vm792_vm6 = vcmask 523264  }
  0x56   : > { %v325_v5 = vld [vmem:[%s323_s17] sm:$0x1]  ;;  %v326_v6 = vld [vmem:[%s323_s17 + $0x1] sm:$0x1]  ;;  %2025 = vmatpush3.bf16.msra.mxu0 %v2176_v33  ;;  %v2180_v37 = vld [vmem:[#allocation2 + $0x88] sm:$0xff]   ;;  %s2360_s19 = smov 64  }
  0x57   : > { %v327_v8 = vunpack.c.l.bf16 %v325_v5  ;;  %v328_v9 = vunpack.c.l.bf16 %v326_v6  ;;  %v517_v21 = vrot.slane %v2359_v20, %v2537_v10  ;;  %2026 = vmatprep.subr.bf16.mxu0 %v2179_v34  ;;  %v2183_v38 = vld [vmem:[#allocation2 + $0xd0] sm:$0xff]   ;;  %v2181_v40 = vld [vmem:[#allocation2 + $0x58] sm:$0xff]   ;;  %v2185_v44 = vld [vmem:[#allocation2 + $0x60] sm:$0xff]   ;;  %vm494_vm14 = vsmask.f32 256  ;;  %s2363_s18 = smov 96  }
  0x58   : > { %v2178_v39 = vld [vmem:[#allocation2 + $0x10] sm:$0xff]   ;;  %v2187_v42 = vld [vmem:[#allocation2 + $0xd8] sm:$0xff]   ;;  %v2186_v46 = vld [vmem:[#allocation2 + $0x20] sm:$0xff]   ;;  %vm548_vm2 = vsmask.f32 7448  ;;  %vm2362_vm7 = vmmov 0  }
  0x59   : > { %v333_v11 = vcombine.low %v327_v8, %v328_v9  ;;  %v2550_v24 = vcombine.high %v517_v21, %v517_v21  ;;  %v1925_v26 = vrot.slane %v517_v21, 9  ;;  %v2184_v41 = vld [vmem:[#allocation2 + $0x90] sm:$0xff]   ;;  %v2182_v43 = vld [vmem:[#allocation2 + $0x18] sm:$0xff]   ;;  %v2189_v47 = vld [vmem:[#allocation2 + $0x68] sm:$0xff]   ;;  %v551_v48 = vshrl.u32 %v517_v21, 16  ;;  %s312_s20 = sand.u32 1, %s2343_s25  }
  0x5a   : > { %2027 = vmatpush3.bf16.msra.mxu0 %v2180_v37  ;;  %v2188_v45 = vld [vmem:[#allocation2 + $0x98] sm:$0xff]   ;;  %v554_v49 = vshll.u32 %v517_v21, 16  ;;  %v438_v50 = vld [vmem:[%s319_s10 + $0x4] sm:$0x3]  ;;  %v436_v53 = vld [vmem:[%s319_s10] sm:$0x3] }
  0x5b   : > { %v340_v13 = vrot.slane %v333_v11, %v2537_v10  ;;  %v614_v27 = vrot.slane %v2550_v24, 7  ;;  %2028 = vmatprep.subr.bf16.mxu0 %v2183_v38  ;;  %v553_v51 = vrot.slane %v551_v48, 6  ;;  %vm2566_vm12 = vmor %vm543_vm10, %vm544_vm11  ;;  %v560_v58 = vshll.u32 %v2550_v24, 16  ;;  %v439_v61 = vld [vmem:[%s319_s10 + $0x6] sm:$0x3]  ;;  %v2190_v21 = vld [vmem:[#allocation2 + $0x28] sm:$0xff]  }
  0x5c   : > { %v556_v52 = vrot.slane %v554_v49, 7  ;;  %v437_v0 = vld [vmem:[%s319_s10 + $0x2] sm:$0x3]  ;;  %vm2579_vm4 = vmand %vm493_vm3, %vm494_vm14  ;;  %v2193_v33 = vld [vmem:[#allocation2 + $0x70] sm:$0xff]   ;;  %s1918_s21 = sshll.u32 %s312_s20, 3  ;;  %s1998_s8 = sshll.u32 %s2427_s28, 7 }
  0x5d   : > { %2076 = vmatprep.subr.msk.mxu1 %vm348_vm1, %v340_v13  ;;  %v2559_v28 = vsel %vm2552_vm8, %v1925_v26, %v614_v27  ;;  %v562_v11 = vrot.slane %v560_v58, 7  ;;  %v2192_v32 = vld [vmem:[#allocation2 + $0xa0] sm:$0xff]   ;;  %v2194_v34 = vld [vmem:[#allocation2 + $0x30] sm:$0xff]   ;;  %s314_s22 = scalar_lea.vmem [#allocation7], %s1918_s21  ;;  %s2834_s10 = scalar_lea.hbm %s2886_s7, %s1998_s8 }
  0x5e   : > { %2077 = vmatpush3.msk.msra.mxu1 %vm348_vm1, %v340_v13  ;;  %2029 = vmatpush3.bf16.msra.mxu0 %v2184_v41  ;;  %v557_v62 = vor.u32 %v556_v52, %v553_v51  ;;  %vm2574_vm1 = vmor %vm2566_vm12, %vm546_vm13  ;;  %v2199_v49 = vld [vmem:[#allocation2 + $0xf0] sm:$0xff]   ;;  %s1814_s23 = sshll.u32 %s314_s22, 4  ;;  %p2912_p1 = scmp.ne.s32.totalorder %s2891_s11, 0  ;;  %s2829_s23 = int_to_ptr.vmem [resolvable:$true] %s1814_s23 }
  0x5f   : > { %2079 = vmatmul.mubr.msk.f32.vlgmr.msra.gmra.mrb[0].mxu1 %vm341_vm0, %v330_v12  ;;  %2002 = vmatprep.subr.bf16.mxu1 %v2171_v29  ;;  %vm501_vm0 = vsmask.f32 2304  ;;  %vm2592_vm3 = vmor %vm2574_vm1, %vm548_vm2  ;;  %s2281_s28 = scalar_lea.vmem %s2829_s23, 128  ;;  %s2364_s13 = smov [#allocation7]  }
  0x60   : > { %2003 = vmatpush3.bf16.msra.mxu1 %v2172_v30  ;;  %2030 = vmatprep.subr.bf16.mxu0 %v2187_v42  ;;  %vm2585_vm5 = vmand %vm500_vm15, %vm501_vm0  ;;  %p2282_p12 = scmp.ne.s32.totalorder %s2829_s23, %s2281_s28  ;;  %s2285_s16 = sshll.u32 %s2364_s13, 4  ;;  %s2286_s16 = int_to_ptr.vmem [resolvable:$false] %s2285_s16 }
  0x61   : > { %2004 = vmatprep.subr.bf16.mxu1 %v2173_v31  ;;  %p2288_p4 = scmp.lt.s32.totalorder %s2829_s23, %s2286_s16 }
  0x62   : > { %2031 = vmatpush3.bf16.msra.mxu0 %v2188_v45  ;;  %p2283_p2 = pnand %p2282_p12, %p2912_p1 }
  0x64   : > { %2005 = vmatpush3.bf16.msra.mxu1 %v2174_v35  ;;  %p2284_p3 = pneg %p2283_p2 }
  0x65   : > { %2006 = vmatprep.subr.bf16.mxu1 %v2177_v36 }
  0x68   : > { %2007 = vmatpush3.bf16.msra.mxu1 %v2178_v39  ;;  %v2195_v39 = vld [vmem:[#allocation2 + $0xe8] sm:$0xff]  }
  0x69   : > { %2008 = vmatprep.subr.bf16.mxu1 %v2181_v40  ;;  %v2197_v40 = vld [vmem:[#allocation2 + $0x78] sm:$0xff]  }
  0x6c   : > { %2009 = vmatpush3.bf16.msra.mxu1 %v2182_v43 }
  0x6d   : > { %2010 = vmatprep.subr.bf16.mxu1 %v2185_v44  ;;  %v2196_v44 = vld [vmem:[#allocation2 + $0xa8] sm:$0xff]  }
  0x70   : > { %2011 = vmatpush3.bf16.msra.mxu1 %v2186_v46 }
  0x71   : > { %2012 = vmatprep.subr.bf16.mxu1 %v2189_v47 }
  0x74   : > { %2013 = vmatpush3.bf16.msra.mxu1 %v2190_v21 }
  0x75   : > { %2014 = vmatprep.subr.bf16.mxu1 %v2193_v33 }
  0x78   : > { %2015 = vmatpush3.bf16.msra.mxu1 %v2194_v34 }
  0x79   : > { %2016 = vmatprep.subr.bf16.mxu1 %v2197_v40 }
 0x132   : > { %v2080_v14 = vpop.f32.mrb[0].mxu1 }
 0x133   : > { %v429_v15 = vcombine.high %v2080_v14, %v2080_v14  ;;  %v417_v16 = vpop.f32.mrb[1].mxu1  ;;  %v434_v17 = vpack.c.bf16 %v2080_v14, %v2080_v14 }
 0x134   : > { %v428_v18 = vcombine.high %v417_v16, %v417_v16  ;;  %v432_v19 = vpack.c.bf16 %v417_v16, %v417_v16  ;;  %v558_v16 = vrot.slane %v557_v62, 2 }
 0x135   : > { %448 = vrot.lane.b32.xlu1 %v434_v17, %s2358_s29  ;;  %v435_v22 = vpack.c.bf16 %v429_v15, %v429_v15 }
 0x136   : > { %444 = vrot.lane.b32.xlu0 %v432_v19, %s2358_s29  ;;  %v433_v23 = vpack.c.bf16 %v428_v18, %v428_v18  ;;  %v2612_v38 = vsel %vm2592_vm3, %v558_v16, %v562_v11 }
 0x139   : > { %450 = vrot.lane.b32.xlu1 %v435_v22, %s2358_s29  ;;  %v2191_v22 = vld [vmem:[#allocation2 + $0xe0] sm:$0xff]  }
 0x13a   : > { %446 = vrot.lane.b32.xlu0 %v433_v23, %s2358_s29  ;;  %2032 = vmatprep.subr.bf16.mxu0 %v2191_v22 }
 0x13b   : > { %2033 = vmatpush3.bf16.msra.mxu0 %v2192_v32 }
 0x13c   : > { %2034 = vmatprep.subr.bf16.mxu0 %v2195_v39 }
 0x13f   : > { %2035 = vmatpush3.bf16.msra.mxu0 %v2196_v44 }
 0x140   : > { %2036 = vmatprep.subr.bf16.mxu0 %v2199_v49  ;;  %v2201_v49 = vld [vmem:[#allocation2 + $0xf8] sm:$0xff]  }
 0x1a7   : > { %v449_v54 = vpop.permute.xlu1 %448 }
 0x1a8   : > { %v461_v55 = vsel %vm452_vm9, %v438_v50, %v449_v54  ;;  %v445_v56 = vpop.permute.xlu0 %444  ;;  %v2198_v54 = vld [vmem:[#allocation2 + $0x38] sm:$0xff]  }
 0x1a9   : > { %v477_v59 = vshrl.u32 %v461_v55, 16  ;;  %v455_v60 = vsel %vm452_vm9, %v436_v53, %v445_v56  ;;  %v480_v2 = vshll.u32 %v461_v55, 16  ;;  %2017 = vmatpush3.bf16.msra.mxu1 %v2198_v54 }
 0x1aa   : > { %v465_v63 = vshrl.u32 %v455_v60, 16  ;;  %v468_v7 = vshll.u32 %v455_v60, 16 }
 0x1ab   : > { %v479_v1 = vrot.slane %v477_v59, 7  ;;  %v451_v3 = vpop.permute.xlu1 %450 }
 0x1ac   : > { %v467_v6 = vrot.slane %v465_v63, 7  ;;  %v464_v8 = vsel %vm452_vm9, %v439_v61, %v451_v3  ;;  %v447_v9 = vpop.permute.xlu0 %446  ;;  %v2200_v63 = vld [vmem:[#allocation2 + $0xb0] sm:$0xff]  }
 0x1ad   : > { %v482_v13 = vor.u32 %v480_v2, %v479_v1  ;;  %v483_v14 = vshrl.u32 %v464_v8, 16  ;;  %v458_v15 = vsel %vm452_vm9, %v437_v0, %v447_v9  ;;  %v486_v26 = vshll.u32 %v464_v8, 16  ;;  %2037 = vmatpush3.bf16.msra.mxu0 %v2200_v63 }
 0x1ae   : > { %v470_v17 = vor.u32 %v468_v7, %v467_v6  ;;  %v471_v18 = vshrl.u32 %v458_v15, 16  ;;  %v474_v27 = vshll.u32 %v458_v15, 16  ;;  %2038 = vmatprep.subr.bf16.mxu0 %v2201_v49 }
 0x1af   : > { %v498_v23 = vsel %vm2579_vm4, 0, %v482_v13  ;;  %v485_v24 = vrot.slane %v483_v14, 7 }
 0x1b0   : > { %v2600_v29 = vsel %vm2585_vm5, %v498_v23, 0  ;;  %v496_v30 = vsel %vm2579_vm4, 0, %v470_v17  ;;  %v473_v31 = vrot.slane %v471_v18, 7 }
 0x1b1   : > { %v2606_v35 = vrot.slane %v2600_v29, %v2537_v10  ;;  %v503_v36 = vsel %vm2585_vm5, %v496_v30, 0  ;;  %v488_v37 = vor.u32 %v486_v26, %v485_v24 }
 0x1b2   : > { %v2615_v41 = vrot.slane %v503_v36, %v2537_v10  ;;  %v2618_v42 = vcombine.low %v2359_v20, %v503_v36  ;;  %v476_v43 = vor.u32 %v474_v27, %v473_v31 }
 0x1b3   : > { %v499_v45 = vsel %vm2579_vm4, 0, %v488_v37  ;;  %v2624_v46 = vcombine.high %v2606_v35, %v2606_v35  ;;  %v593_v47 = vshrl.u32 %v2606_v35, 16  ;;  %v596_v48 = vshll.u32 %v2606_v35, 16 }
 0x1b4   : > { %v2630_v50 = vsel %vm2585_vm5, %v499_v45, 0  ;;  %v497_v51 = vsel %vm2579_vm4, 0, %v476_v43  ;;  %v526_v52 = vcombine.high %v2615_v41, %v2615_v41  ;;  %v565_v53 = vshrl.u32 %v2615_v41, 16 }
 0x1b5   : > { %v2639_v55 = vrot.slane %v2630_v50, %v2537_v10  ;;  %v2643_v56 = vsel %vm2585_vm5, %v497_v51, 0  ;;  %v709_v57 = vcombine.low %v2600_v29, %v2630_v50  ;;  %v595_v58 = vrot.slane %v593_v47, 6 }
 0x1b6   : > { %v533_v59 = vrot.slane %v2643_v56, %v2537_v10  ;;  %v656_v60 = vcombine.low %v2643_v56, %v2600_v29  ;;  %v708_v61 = vcombine.low %v503_v36, %v2643_v56  ;;  %v598_v62 = vrot.slane %v596_v48, 7 }
 0x1b7   : > { %v723_v0 = vrot.slane %v709_v57, %v2537_v10  ;;  %v602_v1 = vshll.u32 %v2624_v46, 16  ;;  %v2656_v2 = vcombine.high %v2639_v55, %v2639_v55  ;;  %v638_v3 = vshrl.u32 %v2639_v55, 16 }
 0x1b8   : > { %v716_v4 = vrot.slane %v708_v61, %v2537_v10  ;;  %v534_v6 = vcombine.high %v533_v59, %v533_v59  ;;  %v579_v7 = vshrl.u32 %v533_v59, 16  ;;  %v582_v8 = vshll.u32 %v533_v59, 16 }
 0x1b9   : > { %v599_v9 = vor.u32 %v598_v62, %v595_v58  ;;  %v604_v11 = vrot.slane %v602_v1, 7  ;;  %v640_v13 = vrot.slane %v638_v3, 6  ;;  %v641_v14 = vshll.u32 %v2639_v55, 16 }
 0x1ba   : > { %v724_v15 = vcombine.low %v716_v4, %v723_v0  ;;  %v581_v16 = vrot.slane %v579_v7, 6  ;;  %v584_v17 = vrot.slane %v582_v8, 7  ;;  %v588_v18 = vshll.u32 %v534_v6, 16 }
 0x1bb   : > { %v600_v21 = vrot.slane %v599_v9, 2  ;;  %v643_v22 = vrot.slane %v641_v14, 7  ;;  %v647_v23 = vshll.u32 %v2656_v2, 16  ;;  %v567_v24 = vrot.slane %v565_v53, 6 }
 0x1bc   : > { %725 = vrot.lane.b32.xlu0 %v724_v15, %s2360_s19  ;;  %v585_v26 = vor.u32 %v584_v17, %v581_v16  ;;  %v590_v27 = vrot.slane %v588_v18, 7  ;;  %v568_v30 = vshll.u32 %v2615_v41, 16  ;;  %v574_v31 = vshll.u32 %v526_v52, 16 }
 0x1bd   : > { %v605_v32 = vsel %vm2592_vm3, %v600_v21, %v604_v11  ;;  %v644_v33 = vor.u32 %v643_v22, %v640_v13  ;;  %v649_v34 = vrot.slane %v647_v23, 7  ;;  %v1926_v36 = vrot.slane %v2615_v41, 9  ;;  %v2203_v41 = vld [vmem:[#allocation2 + $0xb8] sm:$0xff]  }
 0x1be   : > { %v586_v37 = vrot.slane %v585_v26, 2  ;;  %v570_v39 = vrot.slane %v568_v30, 7  ;;  %v576_v40 = vrot.slane %v574_v31, 7  ;;  %v618_v43 = vrot.slane %v526_v52, 7  ;;  %2039 = vmatpush3.bf16.msra.mxu0 %v2203_v41  ;;  %v2209_v41 = vld [vmem:[#allocation5 + $0x40] sm:$0xff]  }
 0x1bf   : > { %v645_v44 = vrot.slane %v644_v33, 2  ;;  %v1927_v45 = vrot.slane %v533_v59, 9  ;;  %v622_v47 = vrot.slane %v534_v6, 7  ;;  %v1928_v48 = vrot.slane %v2606_v35, 9  ;;  %2051 = vmatprep.subr.bf16.mxu0 %v2209_v41 }
 0x1c0   : > { %v591_v51 = vsel %vm2592_vm3, %v586_v37, %v590_v27  ;;  %v571_v53 = vor.u32 %v570_v39, %v567_v24  ;;  %v619_v54 = vsel %vm2552_vm8, %v1926_v36, %v618_v43  ;;  %v626_v57 = vrot.slane %v2624_v46, 7  ;;  %v2202_v43 = vld [vmem:[#allocation2 + $0x100] sm:$0xff]  }
 0x1c1   : > { %v650_v58 = vsel %vm2592_vm3, %v645_v44, %v649_v34  ;;  %v673_v52 = vcombine.low %v591_v51, %v605_v32  ;;  %v623_v59 = vsel %vm2552_vm8, %v1927_v45, %v622_v47  ;;  %v1929_v35 = vrot.slane %v2639_v55, 9  ;;  %v2204_v47 = vld [vmem:[#allocation2 + $0x108] sm:$0xff]  }
 0x1c2   : > { %v728_v61 = vcombine.low %v605_v32, %v650_v58  ;;  %v772_v62 = vcombine.low %v650_v58, %v2612_v38  ;;  %v572_v63 = vrot.slane %v571_v53, 2  ;;  %v627_v0 = vsel %vm2552_vm8, %v1928_v48, %v626_v57  ;;  %v2206_v53 = vld [vmem:[#allocation2 + $0x118] sm:$0xff]   ;;  %v2208_v57 = vld [vmem:[#allocation5 + $0x88] sm:$0xff]   ;;  %v2210_v58 = vld [vmem:[#allocation5] sm:$0xff]  }
 0x1c3   : > { %v687_v46 = vrot.slane %v673_v52, %v2537_v10  ;;  %v653_v1 = vrot.slane %v2656_v2, 7  ;;  %v691_v3 = vcombine.low %v2559_v28, %v619_v54  ;;  %v692_v4 = vcombine.low %v623_v59, %v627_v0  ;;  %v2211_v52 = vld [vmem:[#allocation5 + $0x48] sm:$0xff]  }
 0x1c4   : > { %v779_v6 = vrot.slane %v772_v62, %v2537_v10  ;;  %v577_v55 = vsel %vm2592_vm3, %v572_v63, %v576_v40  ;;  %v744_v7 = vcombine.low %v619_v54, %v623_v59  ;;  %v663_v8 = vrot.slane %v2618_v42, %v2537_v10  ;;  %v2207_v54 = vld [vmem:[#allocation5 + $0x80] sm:$0xff]   ;;  %v2212_v59 = vld [vmem:[#allocation5 + $0x8] sm:$0xff]   ;;  %v2215_v62 = vld [vmem:[#allocation5 + $0x58] sm:$0xff]  }
 0x1c5   : > { %v672_v9 = vcombine.low %v2612_v38, %v577_v55  ;;  %v727_v11 = vcombine.low %v577_v55, %v591_v51  ;;  %v654_v13 = vsel %vm2552_vm8, %v1929_v35, %v653_v1  ;;  %v699_v2 = vrot.slane %v691_v3, %v2537_v10  ;;  %v2205_v51 = vld [vmem:[#allocation2 + $0x110] sm:$0xff]   ;;  %v2216_v63 = vld [vmem:[#allocation5 + $0x18] sm:$0xff]   ;;  %v1930_v55 = vld [vmem:[%s2883_s4] ss:$0 sm:$0xff] }
 0x1c6   : > { %v780_v14 = vcombine.low %v687_v46, %v779_v6  ;;  %v745_v15 = vcombine.low %v627_v0, %v654_v13  ;;  %v752_v16 = vrot.slane %v744_v7, %v2537_v10  ;;  %v783_v17 = vcombine.low %v654_v13, %v2559_v28  ;;  %v2213_v35 = vld [vmem:[#allocation5 + $0x50] sm:$0xff]   ;;  %v2217_v0 = vld [vmem:[#allocation5 + $0x60] sm:$0xff]  }
 0x1c7   : > { %v680_v18 = vrot.slane %v672_v9, %v2537_v10  ;;  %v706_v21 = vrot.slane %v692_v4, %v2537_v10  ;;  %v670_v42 = vrot.slane %v656_v60, %v2537_v10  ;;  %v2361_v24 = vmov 0.0  }
 0x1c8   : > { %781 = vrot.lane.b32.xlu0 %v780_v14, %s2360_s19  ;;  %v759_v22 = vrot.slane %v745_v15, %v2537_v10  ;;  %v790_v23 = vrot.slane %v783_v17, %v2537_v10  ;;  %2081 = vmatprep.subr.bf16.mxu1 %v2361_v24  ;;  %v763_v26 = vcombine.low %v2630_v50, %v2359_v20 }
 0x1c9   : > { %v688_v27 = vcombine.low %v680_v18, %v687_v46  ;;  %v707_v30 = vcombine.low %v699_v2, %v706_v21  ;;  %v671_v31 = vcombine.low %v663_v8, %v670_v42  ;;  %v735_v32 = vrot.slane %v727_v11, %v2537_v10  ;;  %v2218_v46 = vld [vmem:[#allocation5 + $0x20] sm:$0xff]  }
 0x1ca   : > { %v791_v33 = vcombine.low %v706_v21, %v790_v23  ;;  %v770_v29 = vrot.slane %v763_v26, %v2537_v10  ;;  %v742_v56 = vrot.slane %v728_v61, %v2537_v10  ;;  %v760_v36 = vcombine.low %v752_v16, %v759_v22  ;;  %v2214_v61 = vld [vmem:[#allocation5 + $0x10] sm:$0xff]  }
 0x1cb   : > { %689 = vrot.lane.b32.xlu1 %v688_v27, %s2360_s19 }
 0x1cc   : > { %v771_v60 = vcombine.low %v670_v42, %v770_v29  ;;  %v743_v34 = vcombine.low %v735_v32, %v742_v56 }
 0x1cf   : > { %761 = vrot.lane.b32.xlu1 %v760_v36, %s2360_s19 }
 0x22e   : > { %v726_v37 = vpop.permute.xlu0 %725 }
 0x22f   : > { %v799_v50 = vsel %vm792_vm6, %v707_v30, %v726_v37 }
 0x230   : > { %1139 = vmatprep.mubr.bf16.mxu1 %v799_v50 }
 0x23a   : > { %v782_v39 = vpop.permute.xlu0 %781 }
 0x23b   : > { %v807_v40 = vsel %vm792_vm6, %v771_v60, %v782_v39 }
 0x23c   : > { %1180 = vmatprep.mubr.bf16.mxu0 %v807_v40 }
 0x23d   : > { %v690_v44 = vpop.permute.xlu1 %689 }
 0x23e   : > { %v795_v45 = vsel %vm792_vm6, %v671_v31, %v690_v44 }
 0x23f   : > { %1140 = vmatmul.mubr.bf16.vlgmr.msra.gmra.mrb[4].mxu1 %v795_v45 }
 0x240   : > { %2082 = vmatpush3.bf16.msra.mxu1 %v2202_v43  ;;  %2089 = vmatprep.mubr.msk.bf16.mxu1 %vm2362_vm7, %v2361_v24 }
 0x241   : > { %v762_v48 = vpop.permute.xlu1 %761  ;;  %2083 = vmatprep.subr.bf16.mxu1 %v2361_v24 }
 0x242   : > { %v803_v49 = vsel %vm792_vm6, %v743_v34, %v762_v48  ;;  %v2219_v48 = vld [vmem:[#allocation5 + $0x68] sm:$0xff]  }
 0x243   : > { %1181 = vmatmul.mubr.bf16.vlgmr.msra.gmra.mrb[0].mxu0 %v803_v49  ;;  %v2220_v49 = vld [vmem:[#allocation5 + $0x28] sm:$0xff]  }
 0x244   : > { %2084 = vmatpush3.bf16.msra.mxu1 %v2204_v47  ;;  %2052 = vmatpush3.bf16.msra.mxu0 %v2210_v58 }
 0x245   : > { %2085 = vmatprep.subr.bf16.mxu1 %v2361_v24  ;;  %2053 = vmatprep.subr.bf16.mxu0 %v2211_v52 }
 0x248   : > { %2086 = vmatpush3.bf16.msra.mxu1 %v2205_v51  ;;  %2054 = vmatpush3.bf16.msra.mxu0 %v2212_v59 }
 0x249   : > { %2087 = vmatprep.subr.bf16.mxu1 %v2361_v24  ;;  %2055 = vmatprep.subr.bf16.mxu0 %v2213_v35 }
 0x24c   : > { %2088 = vmatpush3.bf16.msra.mxu1 %v2206_v53  ;;  %2056 = vmatpush3.bf16.msra.mxu0 %v2214_v61 }
 0x24d   : > { %2093 = vmatprep.subr.bf16.mxu1 %v2361_v24  ;;  %2057 = vmatprep.subr.bf16.mxu0 %v2215_v62 }
 0x24f   : > { %2090 = vmatmul.mubr.msk.bf16.vlgmr.msra.gmra.mrb[8].mxu1 %vm792_vm6, %v791_v33 }
 0x250   : > { %2097 = vmatprep.mubr.msk.bf16.mxu1 %vm2362_vm7, %v2361_v24  ;;  %2094 = vmatpush3.bf16.msra.mxu1 %v2207_v54 }
 0x251   : > { %2095 = vmatprep.subr.bf16.mxu1 %v2361_v24  ;;  %2058 = vmatpush3.bf16.msra.mxu0 %v2216_v63 }
 0x252   : > { %2059 = vmatprep.subr.bf16.mxu0 %v2217_v0 }
 0x254   : > { %2096 = vmatpush3.bf16.msra.mxu1 %v2208_v57 }
 0x255   : > { %2060 = vmatpush3.bf16.msra.mxu0 %v2218_v46 }
 0x256   : > { %2061 = vmatprep.subr.bf16.mxu0 %v2219_v48 }
 0x259   : > { %2062 = vmatpush3.bf16.msra.mxu0 %v2220_v49 }
 0x312   : > { %v2018_v1 = vpop.f32.mrb[4].mxu1 }
 0x313   : > { %v2019_v3 = vpop.f32.mrb[5].mxu1 }
 0x314   : > { %v2020_v4 = vadd.f32 %v2019_v3, %v2018_v1  ;;  %v2021_v6 = vpop.f32.mrb[6].mxu1 }
 0x315   : > { %v2022_v7 = vpop.f32.mrb[7].mxu1 }
 0x316   : > { %v2023_v8 = vadd.f32 %v2022_v7, %v2021_v6  ;;  %v2040_v9 = vpop.f32.mrb[0].mxu0  ;;  %v1142_v13 = vadd.f32 %v2020_v4, %v1930_v55  ;;  %v2221_v6 = vld [vmem:[#allocation5 + $0x70] sm:$0xff]  }
 0x317   : > { %v2041_v11 = vpop.f32.mrb[1].mxu0  ;;  %2063 = vmatprep.subr.bf16.mxu0 %v2221_v6 }
 0x318   : > { %v2042_v2 = vadd.f32 %v2041_v11, %v2040_v9  ;;  %v2043_v14 = vpop.f32.mrb[2].mxu0  ;;  %v1145_v16 = vadd.f32 %v2023_v8, %v1930_v55 }
 0x319   : > { %v2044_v15 = vpop.f32.mrb[3].mxu0 }
 0x31a   : > { %v2045_v17 = vadd.f32 %v2044_v15, %v2043_v14  ;;  %v1183_v18 = vadd.f32 %v2042_v2, %v1142_v13  ;;  %v2222_v14 = vld [vmem:[#allocation5 + $0x30] sm:$0xff]  }
 0x31b   : > { %2064 = vmatpush3.bf16.msra.mxu0 %v2222_v14 }
 0x31c   : > { %v1186_v21 = vadd.f32 %v2045_v17, %v1145_v16 }
 0x322   : > { %v1223_v42 = vpop.f32.mrb[8].mxu1 }
 0x323   : > { %v1224_v22 = vadd.f32 %v1223_v42, %v1183_v18  ;;  %v2091_v23 = vpop.f32.mrb[9].mxu1 }
 0x324   : > { %v1226_v24 = vpop.f32.mrb[10].mxu1 }
 0x325   : > { %v1230_v26 = vmax.f32 %v1224_v22, 0.0  ;;  %v1227_v27 = vadd.f32 %v1226_v24, %v1186_v21  ;;  %v2092_v30 = vpop.f32.mrb[11].mxu1 }
 0x327   : > { %v1234_v31 = vcombine.high %v1230_v26, %v1230_v26  ;;  %v1238_v32 = vpack.c.bf16 %v1230_v26, %v1230_v26  ;;  %v1231_v33 = vmax.f32 %v1227_v27, 0.0 }
 0x329   : > { %v1239_v29 = vpack.c.bf16 %v1234_v31, %v1234_v31  ;;  %v1243_v56 = vshrl.u32 %v1238_v32, 16  ;;  %v1235_v60 = vcombine.high %v1231_v33, %v1231_v33  ;;  %v1240_v34 = vpack.c.bf16 %v1231_v33, %v1231_v33 }
 0x32a   : > { %v1246_v37 = vshll.u32 %v1238_v32, 16 }
 0x32b   : > { %v1245_v36 = vrot.slane %v1243_v56, 7  ;;  %v1250_v50 = vshrl.u32 %v1239_v29, 16  ;;  %v1241_v39 = vpack.c.bf16 %v1235_v60, %v1235_v60  ;;  %v1257_v40 = vshrl.u32 %v1240_v34, 16 }
 0x32c   : > { %v1253_v45 = vshll.u32 %v1239_v29, 16  ;;  %v1260_v53 = vshll.u32 %v1240_v34, 16 }
 0x32d   : > { %v1248_v43 = vor.u32 %v1246_v37, %v1245_v36  ;;  %v1252_v44 = vrot.slane %v1250_v50, 7  ;;  %v1264_v47 = vshrl.u32 %v1241_v39, 16  ;;  %v1259_v51 = vrot.slane %v1257_v40, 7 }
 0x32e   : > { %v1267_v58 = vshll.u32 %v1241_v39, 16 }
 0x32f   : > { %v1255_v54 = vor.u32 %v1253_v45, %v1252_v44  ;;  %v1274_v57 = vsel %vm2579_vm4, 0, %v1248_v43  ;;  %v1266_v41 = vrot.slane %v1264_v47, 7  ;;  %v1262_v59 = vor.u32 %v1260_v53, %v1259_v51 }
 0x330   : > { %v2723_v52 = vsel %vm2585_vm5, %v1274_v57, 0 }
 0x331   : > { %v1275_v35 = vsel %vm2579_vm4, 0, %v1255_v54  ;;  %v1291_v61 = vrot.slane %v2723_v52, %v2537_v10  ;;  %v1269_v62 = vor.u32 %v1267_v58, %v1266_v41  ;;  %v1276_v63 = vsel %vm2579_vm4, 0, %v1262_v59 }
 0x332   : > { %v2733_v0 = vsel %vm2585_vm5, %v1275_v35, 0  ;;  %v2739_v1 = vsel %vm2585_vm5, %v1276_v63, 0 }
 0x333   : > { %v1277_v46 = vsel %vm2579_vm4, 0, %v1269_v62  ;;  %v1299_v3 = vrot.slane %v2733_v0, %v2537_v10  ;;  %v1292_v4 = vcombine.high %v1291_v61, %v1291_v61  ;;  %v1307_v55 = vrot.slane %v2739_v1, %v2537_v10 }
 0x334   : > { %v2747_v7 = vsel %vm2585_vm5, %v1277_v46, 0  ;;  %v1391_v5 = vcombine.low %v2733_v0, %v2739_v1  ;;  %v1968_v8 = vrot.slane %v1291_v61, 9  ;;  %v1310_v27 = vshrl.u32 %v1291_v61, 16 }
 0x335   : > { %v2753_v9 = vrot.slane %v2747_v7, %v2537_v10  ;;  %v1500_v11 = vcombine.low %v2747_v7, %v2359_v20  ;;  %v1300_v13 = vcombine.high %v1299_v3, %v1299_v3  ;;  %v1353_v2 = vrot.slane %v1292_v4, 7 }
 0x336   : > { %v2758_v15 = vrot.slane %v1391_v5, %v2537_v10  ;;  %v2760_v12 = vcombine.high %v1307_v55, %v1307_v55  ;;  %v1969_v16 = vrot.slane %v1299_v3, 9  ;;  %v1970_v17 = vrot.slane %v1307_v55, 9 }
 0x337   : > { %v1507_v18 = vrot.slane %v1500_v11, %v2537_v10  ;;  %v1354_v21 = vsel %vm2552_vm8, %v1968_v8, %v1353_v2  ;;  %v1357_v42 = vrot.slane %v1300_v13, 7  ;;  %v2767_v22 = vcombine.high %v2753_v9, %v2753_v9 }
 0x338   : > { %v1361_v23 = vrot.slane %v2760_v12, 7  ;;  %v1971_v24 = vrot.slane %v2753_v9, 9  ;;  %v1426_v26 = vcombine.low %v2559_v28, %v1354_v21  ;;  %v1313_v33 = vshll.u32 %v1291_v61, 16 }
 0x339   : > { %v1508_v30 = vcombine.low %v2758_v15, %v1507_v18  ;;  %v1358_v31 = vsel %vm2552_vm8, %v1969_v16, %v1357_v42  ;;  %v1388_v32 = vrot.slane %v2767_v22, 7  ;;  %v1312_v60 = vrot.slane %v1310_v27, 6 }
 0x33a   : > { %v1362_v29 = vsel %vm2552_vm8, %v1970_v17, %v1361_v23  ;;  %v1481_v56 = vcombine.low %v1354_v21, %v1358_v31  ;;  %v1434_v37 = vrot.slane %v1426_v26, %v2537_v10  ;;  %v1315_v50 = vrot.slane %v1313_v33, 7 }
 0x33b   : > { %1509 = vrot.lane.b32.xlu0 %v1508_v30, %s2360_s19  ;;  %v1389_v34 = vsel %vm2552_vm8, %v1971_v24, %v1388_v32  ;;  %v1427_v36 = vcombine.low %v1358_v31, %v1362_v29  ;;  %v1319_v43 = vshll.u32 %v1292_v4, 16  ;;  %v1324_v44 = vshrl.u32 %v1299_v3, 16 }
 0x33c   : > { %v1522_v39 = vcombine.low %v1389_v34, %v2559_v28  ;;  %v1482_v40 = vcombine.low %v1362_v29, %v1389_v34  ;;  %v1489_v47 = vrot.slane %v1481_v56, %v2537_v10  ;;  %v1316_v48 = vor.u32 %v1315_v50, %v1312_v60 }
 0x33d   : > { %v1441_v45 = vrot.slane %v1427_v36, %v2537_v10  ;;  %v1327_v49 = vshll.u32 %v1299_v3, 16  ;;  %v1326_v53 = vrot.slane %v1324_v44, 6  ;;  %v1333_v54 = vshll.u32 %v1300_v13, 16 }
 0x33e   : > { %v1529_v51 = vrot.slane %v1522_v39, %v2537_v10  ;;  %v1496_v25 = vrot.slane %v1482_v40, %v2537_v10  ;;  %v1317_v41 = vrot.slane %v1316_v48, 2  ;;  %v1338_v59 = vshrl.u32 %v1307_v55, 16 }
 0x33f   : > { %v1442_v57 = vcombine.low %v1434_v37, %v1441_v45  ;;  %v1329_v58 = vrot.slane %v1327_v49, 7  ;;  %v1341_v61 = vshll.u32 %v1307_v55, 16  ;;  %v1321_v62 = vrot.slane %v1319_v43, 7  ;;  %v2223_v55 = vld [vmem:[#allocation5 + $0x78] sm:$0xff]  }
 0x340   : > { %v1530_v28 = vcombine.low %v1441_v45, %v1529_v51  ;;  %v1497_v35 = vcombine.low %v1489_v47, %v1496_v25  ;;  %v1340_v46 = vrot.slane %v1338_v59, 6  ;;  %v1347_v3 = vshll.u32 %v2760_v12, 16  ;;  %v2224_v12 = vld [vmem:[#allocation5 + $0x38] sm:$0xff]   ;;  %2065 = vmatprep.subr.bf16.mxu0 %v2223_v55 }
 0x341   : > { %1443 = vrot.lane.b32.xlu1 %v1442_v57, %s2360_s19  ;;  %v1330_v63 = vor.u32 %v1329_v58, %v1326_v53  ;;  %v1343_v4 = vrot.slane %v1341_v61, 7  ;;  %v1373_v6 = vshrl.u32 %v2753_v9, 16  ;;  %v1376_v5 = vshll.u32 %v2753_v9, 16  ;;  %2066 = vmatpush3.bf16.msra.mxu0 %v2224_v12  ;;  %s2836_s19 = scalar_lea.sflag [#allocation4], %s312_s20 }
 0x342   : > { %1498 = vrot.lane.b32.xlu0 %v1497_v35, %s2358_s29  ;;  %2098 = vmatmul.mubr.msk.bf16.vlgmr.msra.gmra.mrb[12].mxu1 %vm452_vm9, %v1530_v28  ;;  %v1390_v8 = vcombine.low %v2359_v20, %v2723_v52  ;;  %v1322_v11 = vsel %vm2592_vm3, %v1317_v41, %v1321_v62  ;;  %v1335_v2 = vrot.slane %v1333_v54, 7  ;;  %v1445_v14 = vcombine.low %v2723_v52, %v2733_v0  ;;  %v1972_v35 = vld [vmem:[%s2885_s6] ss:$0 sm:$0xff] }
 0x343   : > { %v1331_v13 = vrot.slane %v1330_v63, 2  ;;  %v1344_v16 = vor.u32 %v1343_v4, %v1340_v46  ;;  %v1375_v17 = vrot.slane %v1373_v6, 6  ;;  %v1378_v18 = vrot.slane %v1376_v5, 7 }
 0x344   : > { %v1382_v21 = vshll.u32 %v2767_v22, 16  ;;  %v1349_v20 = vrot.slane %v1347_v3, 7  ;;  %v1446_v42 = vcombine.low %v2739_v1, %v2747_v7  ;;  %v1398_v52 = vrot.slane %v1390_v8, %v2537_v10 }
 0x345   : > { %v1336_v9 = vsel %vm2592_vm3, %v1331_v13, %v1335_v2  ;;  %v1345_v23 = vrot.slane %v1344_v16, 2  ;;  %v1379_v26 = vor.u32 %v1378_v18, %v1375_v17  ;;  %v1407_v0 = vcombine.low %v2612_v38, %v1322_v11 }
 0x346   : > { %v1464_v24 = vcombine.low %v1322_v11, %v1336_v9  ;;  %v1453_v27 = vrot.slane %v1445_v14, %v2537_v10  ;;  %v1460_v22 = vrot.slane %v1446_v42, %v2537_v10  ;;  %v1384_v32 = vrot.slane %v1382_v21, 7 }
 0x347   : > { %v1350_v30 = vsel %vm2592_vm3, %v1345_v23, %v1349_v20  ;;  %v1380_v31 = vrot.slane %v1379_v26, 2  ;;  %v1406_v33 = vcombine.low %v1398_v52, %v2758_v15  ;;  %v1415_v56 = vrot.slane %v1407_v0, %v2537_v10 }
 0x348   : > { %v1408_v1 = vcombine.low %v1336_v9, %v1350_v30  ;;  %v1461_v7 = vcombine.low %v1453_v27, %v1460_v22  ;;  %v1472_v40 = vrot.slane %v1464_v24, %v2537_v10  ;;  %vm1536_vm8 = vcmask 785408  }
 0x349   : > { %v1385_v29 = vsel %vm2592_vm3, %v1380_v31, %v1384_v32 }
 0x34a   : > { %v1422_v60 = vrot.slane %v1408_v1, %v2537_v10  ;;  %v1465_v34 = vcombine.low %v1350_v30, %v1385_v29  ;;  %v1511_v36 = vcombine.low %v1385_v29, %v2612_v38 }
 0x34c   : > { %v1423_v37 = vcombine.low %v1415_v56, %v1422_v60  ;;  %v1518_v50 = vrot.slane %v1511_v36, %v2537_v10  ;;  %v1479_v39 = vrot.slane %v1465_v34, %v2537_v10 }
 0x34e   : > { %1424 = vrot.lane.b32.xlu1 %v1423_v37, %s2358_s29  ;;  %v1519_v15 = vcombine.low %v1422_v60, %v1518_v50  ;;  %v1480_v43 = vcombine.low %v1472_v40, %v1479_v39 }
 0x350   : > { %1520 = vrot.lane.b32.xlu0 %v1519_v15, %s2363_s18 }
 0x352   : > { %1462 = vrot.lane.b32.xlu1 %v1461_v7, %s2363_s18  ;;  %s2287_s18 = scalar_lea.vmem %s2286_s16, 256 }
 0x353   : > { %p2289_p7 = scmp.lt.s32.totalorder %s2287_s18, %s2281_s28 }
 0x355   : > { %p2290_p8 = por %p2289_p7, %p2288_p4 }
 0x357   : > { %p2291_p11 = pnand %p2290_p8, %p2284_p3 }
 0x3ad   : > { %v1510_v19 = vpop.permute.xlu0 %1509 }
 0x3b3   : > { %v1444_v44 = vpop.permute.xlu1 %1443 }
 0x3b4   : > { %v1499_v45 = vpop.permute.xlu0 %1498 }
 0x3b5   : > { %v1542_v47 = vsel %vm452_vm9, %v1480_v43, %v1499_v45 }
 0x3b6   : > { %v1544_v51 = vsel %vm792_vm6, %v1542_v47, %v1510_v19 }
 0x3c0   : > { %v1425_v38 = vpop.permute.xlu1 %1424 }
 0x3c1   : > { %v1533_v48 = vsel %vm452_vm9, %v1406_v33, %v1425_v38 }
 0x3c2   : > { %v1521_v49 = vpop.permute.xlu0 %1520  ;;  %v1535_v25 = vsel %vm792_vm6, %v1533_v48, %v1444_v44 }
 0x3c3   : > { %v1546_v10 = vsel %vm1536_vm8, %v1544_v51, %v1521_v49 }
 0x3c4   : > { %1734 = vmatprep.mubr.bf16.mxu0 %v1546_v10  ;;  %v1463_v53 = vpop.permute.xlu1 %1462 }
 0x3c5   : > { %v1538_v54 = vsel %vm1536_vm8, %v1535_v25, %v1463_v53 }
 0x3c6   : > { %1735 = vmatmul.mubr.bf16.vlgmr.msra.gmra.mrb[4].mxu0 %v1538_v54 }
 0x415   : > { %v1777_v57 = vpop.f32.mrb[12].mxu1 }
 0x416   : > { %v2099_v41 = vpop.f32.mrb[13].mxu1 }
 0x417   : > { %v1780_v58 = vpop.f32.mrb[14].mxu1 }
 0x418   : > { %v2100_v59 = vpop.f32.mrb[15].mxu1 }
 0x499   : > { %v2067_v28 = vpop.f32.mrb[4].mxu0 }
 0x49a   : > { %v2068_v61 = vpop.f32.mrb[5].mxu0 }
 0x49b   : > { %v2069_v62 = vadd.f32 %v2068_v61, %v2067_v28  ;;  %v2070_v63 = vpop.f32.mrb[6].mxu0 }
 0x49c   : > { %v2071_v46 = vpop.f32.mrb[7].mxu0 }
 0x49d   : > { %v1737_v3 = vadd.f32 %v2069_v62, %v1972_v35  ;;  %v2072_v4 = vadd.f32 %v2071_v46, %v2070_v63 }
 0x49f   : > { %v1778_v6 = vadd.f32 %v1777_v57, %v1737_v3  ;;  %v1740_v5 = vadd.f32 %v2072_v4, %v1972_v35 }
 0x4a1   : > { %v1784_v8 = vmax.f32 %v1778_v6, 0.0  ;;  %v1781_v55 = vadd.f32 %v1780_v58, %v1740_v5 }
 0x4a3   : > { %v1788_v11 = vcombine.high %v1784_v8, %v1784_v8  ;;  %v1792_v13 = vpack.c.bf16 %v1784_v8, %v1784_v8  ;;  %v1785_v2 = vmax.f32 %v1781_v55, 0.0 }
 0x4a5   : > { %v1793_v14 = vpack.c.bf16 %v1788_v11, %v1788_v11  ;;  %1796 = vst [vmem:[%s314_s22] sm:$0x3] %v1792_v13  ;;  %v1789_v12 = vcombine.high %v1785_v2, %v1785_v2  ;;  %v1794_v16 = vpack.c.bf16 %v1785_v2, %v1785_v2 }
 0x4a7   : > { %1797 = vst [vmem:[%s314_s22 + $0x2] sm:$0x3] %v1793_v14  ;;  %v1795_v17 = vpack.c.bf16 %v1789_v12, %v1789_v12  ;;  %1798 = vst [vmem:[%s314_s22 + $0x4] sm:$0x3] %v1794_v16 }
 0x4a9   : > { %1799 = vst [vmem:[%s314_s22 + $0x6] sm:$0x3] %v1795_v17 }
 0x4aa   : > { %2294 = shalt.err (!%p2291_p11)
}
 0x4ab   : > { %s2295_s14 = scalar_lea.hbm %s2834_s10, 128  ;;  %s2299_s21 = scalar_lea.hbm %s2886_s7, 256 }
 0x4ac   : > { %p2296_p13 = scmp.ne.s32.totalorder %s2834_s10, %s2295_s14  ;;  %p2300_p6 = scmp.lt.u32.totalorder %s2834_s10, %s2886_s7 }
 0x4ad   : > { %p2301_p9 = scmp.lt.u32.totalorder %s2299_s21, %s2295_s14  ;;  %p2303_p12 = scmp.lt.u32.totalorder %s2295_s14, %s2834_s10 }
 0x4ae   : > { %p2297_p5 = pnand %p2296_p13, %p2912_p1 }
 0x4af   : > { %p2302_p10 = por %p2301_p9, %p2300_p6 }
 0x4b0   : > { %p2298_p0 = pneg %p2297_p5 }
 0x4b1   : > { %p2304_p2 = por %p2303_p12, %p2302_p10 }
 0x4b3   : > { %p2305_p3 = pnand %p2304_p2, %p2298_p0 }
 0x4b5   : > { %2308 = shalt.err (!%p2305_p3)
}
 0x4b6   : > { %s2365_s9 = smov 2  }
 0x4b7   : > { %2109 = dma.vmem_to_hbm [thread:$0]  (%p2912_p1), %s2829_s23, 128, %s2834_s10, %s2836_s19, %s2358_s29, %s2358_s29, %s2365_s9  }
 0x4b8 PF: > { %p2126_p4 = scmp.ge.s32.totalorder %s2351_s27, 2  ;;  %s1829_s15 = sand.u32 1, %s2339_s24  }
 0x4b9   : > { %p2913_p7 = scmp.ne.s32.totalorder %s2892_s12, 0  ;;  %s1830_s28 = scalar_lea.sflag [#allocation4], %s1829_s15 }
 0x4bb   : > { %p2119_p8 = pnand %p2126_p4, %p2913_p7 }
 0x4bd   : > { %2334 = dma.done.wait (!%p2119_p8), %s1830_s28, 128  }
 0x4be   : > { %2336 = vsyncadd (!%p2119_p8), %s1830_s28, 4294967168  ;;  %s2914_s11 = sld [smem:[#allocation11_spill]]  ;;  %p19_p11 = scmp.ge.s32.totalorder %s2431_s30, 4  }
 0x4bf   : > { %s2915_s24 = smov %s2343_s25  ;;  %s2916_s25 = smov %s2347_s26 }
 0x4c0   : > { %s2918_s27 = smov %s2431_s30  ;;  %21 = sbr.rel (!%p19_p11) target bundleno = 5 (0x5), region = 95 }
 0x4c4   : > { %s2917_s26 = smov %s2914_s11 }
 0x4c7   :  { %1835 = vsyncpa [#allocation3], 1 }
 0x4c8   :  { %1837 = vsyncpa [#allocation3 + $0x1], 1 }
 0x4c9   :  { %1838 = vsyncpa [#allocation6], 1 }
 0x4ca   :  { %1839 = vsyncpa [#allocation4], 1 }
 0x4cb   :  { %1841 = vsyncpa [#allocation4 + $0x1], 1 }

</bundles_post_ra>
